<compile_context>
chip_gen: v7x
topology: tpu7x:2x2x1
jax: 0.10.0
libtpu: 0.0.40
codegen_flags: <defaults>
</compile_context>

<pallas_src>
import jax
import jax.numpy as jnp
from jax.experimental import pallas as pl
from jax.experimental.pallas import tpu as pltpu

_LANE = 128
_SUBLANE = 8


def _round_up(a: int, m: int) -> int:
    return -(-a // m) * m


def _make_corr_kernel(K: int, R: int):
    """Kernel body with static filter length K and tile rows R (R % 8 == 0)."""

    def corr_kernel(w_ref, x_ref, halo_ref, o_ref):
        # w_ref:    SMEM (K,)       f32  learnable filter taps
        # x_ref:    VMEM (R, 128)   f32  signal rows [t*R, t*R + R)        (t = grid step)
        # halo_ref: VMEM (8, 128)   f32  signal rows [t*R + R, t*R + R + 8)
        # o_ref:    VMEM (R, 128)   f32  out[t*R*128 + r*128 + c]
        main = x_ref[...]                                   # (R, 128) full-vreg tile
        # Hoist all SMEM scalar reads out of the accumulate chain.
        taps = [w_ref[k] for k in range(K)]
        acc = main * taps[0]                                # k = 0: no shift needed
        if K > 1:
            # Rows shifted up by one (first halo row enters at the bottom). Built once.
            up1 = jnp.concatenate([main[1:, :], halo_ref[0:1, :]], axis=0)
            # Lane index, hoisted once out of the tap loop.
            lane = jax.lax.broadcasted_iota(jnp.int32, (R, _LANE), 1)
            for k in range(1, K):
                # x[i + k] for every output position of the tile:
                #   pick main for lanes >= k, up1 for lanes < k (pre-roll domain),
                #   then rotate lanes by -k (== +128-k).  One VPU select + one XLU
                #   roll per tap — no unaligned slices / concats, no masked stores.
                src = jnp.where(lane >= k, main, up1)
                shifted = pltpu.roll(src, _LANE - k, axis=1)
                acc = acc + shifted * taps[k]
        o_ref[...] = acc.astype(o_ref.dtype)

    return corr_kernel


def corr_valid(x: jax.Array, w: jax.Array, *, tile_rows: int = 2048) -> jax.Array:
    """1-D 'valid' cross-correlation of signal x (N,) with filter w (K,)."""
    assert x.ndim == 1 and w.ndim == 1
    N = x.shape[0]
    K = w.shape[0]
    assert N >= K, "valid-mode correlation requires len(input) >= len(filter)"
    assert tile_rows >= _SUBLANE
    # TODO(synk): filters longer than one lane row (K > 128) need a multi-row
    #             lane carry; not implemented in this kernel path.
    assert K <= _LANE, "kernel supports filter lengths up to 128"
    Lout = N - K + 1

    # Rows needed to cover Lout, rounded up to a multiple of 8 sublanes.
    needed_rows = _round_up(-(-Lout // _LANE), _SUBLANE)

    # Tile selection: >= 2 balanced tiles whenever the problem is non-trivial
    # (keeps both v7x TensorCores busy and the pipeline overlapped); the padded
    # tail is at most 8 rows per tile.
    if needed_rows <= 2 * _SUBLANE:
        n_tiles, R = 1, needed_rows
    else:
        n_tiles = max(2, -(-needed_rows // tile_rows))
        R = _round_up(-(-needed_rows // n_tiles), _SUBLANE)

    rows_out = n_tiles * R
    rows_in = rows_out + _SUBLANE   # exactly one (8,128) halo block past the last tile

    # Lane-dense 2-D layout of the (zero-padded) signal: x2d[r, c] = x[r*128 + c].
    x_f32 = x.astype(jnp.float32)
    x2d = jnp.pad(x_f32, (0, rows_in * _LANE - N)).reshape(rows_in, _LANE)
    w_f32 = w.astype(jnp.float32)

    out2d = pl.pallas_call(
        _make_corr_kernel(K, R),
        out_shape=jax.ShapeDtypeStruct((rows_out, _LANE), jnp.float32),
        grid=(n_tiles,),
        in_specs=[
            pl.BlockSpec(memory_space=pltpu.SMEM),                            # filter (K,)
            pl.BlockSpec((R, _LANE), lambda t: (t, 0)),                       # main tile
            pl.BlockSpec((_SUBLANE, _LANE),
                         lambda t: ((t + 1) * (R // _SUBLANE), 0)),           # halo rows
        ],
        out_specs=pl.BlockSpec((R, _LANE), lambda t: (t, 0)),
        compiler_params=pltpu.CompilerParams(
            dimension_semantics=("parallel",),            # independent output tiles
            vmem_limit_bytes=32 * 1024 * 1024,            # safe on v7x, ample for R<=2048
            allow_input_fusion=[False, True, True],       # let pad/reshape fuse in
        ),
    )(w_f32, x2d, x2d)

    # Flatten the lane-dense output and drop the padded tail (extra HBM pass; a
    # fused consumer can take out2d directly — see TODO at top of file).
    return out2d.reshape(-1)[:Lout]


class CorrModuleJax:
    """JAX/Pallas port of CorrModule: learnable 1-D filter; forward = valid-mode
    cross-correlation of the input signal with the filter (forward pass only)."""

    def __init__(self, filter_features: int, key: jax.Array):
        self.filter_features = filter_features
        # torch.nn.init.uniform_(features, -1, 1), deterministic from the given key.
        self.features = jax.random.uniform(
            key, (filter_features,), dtype=jnp.float32, minval=-1.0, maxval=1.0
        )

    def __call__(self, x: jax.Array, *, tile_rows: int = 2048) -> jax.Array:
        return corr_valid(x, self.features, tile_rows=tile_rows)


def _corr_ref(x: jax.Array, w: jax.Array) -> jax.Array:
    """Pure-JAX reference: np.correlate(x, w, mode='valid') semantics in f32."""
    K = w.shape[0]
    Lout = x.shape[0] - K + 1
    acc = jnp.zeros((Lout,), jnp.float32)
    for k in range(K):
        acc = acc + x[k:k + Lout].astype(jnp.float32) * w[k]
    return acc


if __name__ == "__main__":
    key = jax.random.PRNGKey(0)
    k_filt, k_inp = jax.random.split(key)

    K = 8          # filter_features
    N = 4096       # signal length (big enough to exercise a multi-tile grid)

    module = CorrModuleJax(K, k_filt)
    x = jax.random.normal(k_inp, (N,), dtype=jnp.float32)

    # 1) Small tiles -> 4 pipelined grid steps (exercises halo + padded tail).
    out_tiled = jax.block_until_ready(corr_valid(x, module.features, tile_rows=8))
    # 2) Default path through the module API (auto-split into 2 balanced tiles).
    out_default = jax.block_until_ready(module(x))
    # 3) Tiny signal (original toy size, single small tile).
    x_tiny = x[:64]
    out_tiny = jax.block_until_ready(module(x_tiny))

    ref = _corr_ref(x, module.features)
    ref_tiny = _corr_ref(x_tiny, module.features)

    assert out_tiled.shape == (N - K + 1,)
    assert jnp.allclose(out_tiled, ref, atol=1e-5, rtol=1e-5), "tiled mismatch"
    assert jnp.allclose(out_default, ref, atol=1e-5, rtol=1e-5), "default mismatch"
    assert out_tiny.shape == (64 - K + 1,)
    assert jnp.allclose(out_tiny, ref_tiny, atol=1e-5, rtol=1e-5), "tiny mismatch"

    print("KERNEL_OK")
</pallas_src>

<mosaic_0001>
module attributes {stable_mosaic.version = 11 : i64} {
  func.func @corr_kernel(%arg0: i32, %arg1: memref<8xf32, #tpu.memory_space<smem>>, %arg2: memref<8x128xf32, #tpu.memory_space<vmem>>, %arg3: memref<8x128xf32, #tpu.memory_space<vmem>>, %arg4: memref<8x128xf32, #tpu.memory_space<vmem>>) attributes {dimension_semantics = [#tpu.dimension_semantics<parallel>], iteration_bounds = array<i64: 4>, scalar_prefetch = 0 : i64, scratch_operands = 0 : i64, tpu.core_type = #tpu.core_type<tc>, window_params = [{transform_indices = @transform_0, window_bounds = array<i64: 8>}, {transform_indices = @transform_1, window_bounds = array<i64: 8, 128>}, {transform_indices = @transform_2, window_bounds = array<i64: 8, 128>}, {transform_indices = @transform_3, window_bounds = array<i64: 8, 128>}]} {
    %c0 = arith.constant 0 : index
    %c0_0 = arith.constant 0 : index
    %0 = vector.load %arg2[%c0, %c0_0] : memref<8x128xf32, #tpu.memory_space<vmem>>, vector<8x128xf32>
    %c0_1 = arith.constant 0 : index
    %1 = memref.load %arg1[%c0_1] : memref<8xf32, #tpu.memory_space<smem>>
    %c1 = arith.constant 1 : index
    %2 = memref.load %arg1[%c1] : memref<8xf32, #tpu.memory_space<smem>>
    %c2 = arith.constant 2 : index
    %3 = memref.load %arg1[%c2] : memref<8xf32, #tpu.memory_space<smem>>
    %c3 = arith.constant 3 : index
    %4 = memref.load %arg1[%c3] : memref<8xf32, #tpu.memory_space<smem>>
    %c4 = arith.constant 4 : index
    %5 = memref.load %arg1[%c4] : memref<8xf32, #tpu.memory_space<smem>>
    %c5 = arith.constant 5 : index
    %6 = memref.load %arg1[%c5] : memref<8xf32, #tpu.memory_space<smem>>
    %c6 = arith.constant 6 : index
    %7 = memref.load %arg1[%c6] : memref<8xf32, #tpu.memory_space<smem>>
    %c7 = arith.constant 7 : index
    %8 = memref.load %arg1[%c7] : memref<8xf32, #tpu.memory_space<smem>>
    %9 = vector.broadcast %1 : f32 to vector<8x128xf32>
    %10 = arith.mulf %0, %9 : vector<8x128xf32>
    %11 = vector.extract_strided_slice %0 {offsets = [1, 0], sizes = [7, 128], strides = [1, 1]} : vector<8x128xf32> to vector<7x128xf32>
    %c0_2 = arith.constant 0 : index
    %c0_3 = arith.constant 0 : index
    %12 = vector.load %arg3[%c0_2, %c0_3] : memref<8x128xf32, #tpu.memory_space<vmem>>, vector<1x128xf32>
    %13 = tpu.concatenate %11, %12 in 0 : vector<7x128xf32>, vector<1x128xf32> -> vector<8x128xf32>
    %14 = tpu.iota {dimensions = array<i32: 1>} : vector<8x128xi32>
    %c1_i32 = arith.constant 1 : i32
    %15 = vector.broadcast %c1_i32 : i32 to vector<8x128xi32>
    %16 = arith.cmpi sge, %14, %15 : vector<8x128xi32>
    %17 = arith.select %16, %0, %13 : vector<8x128xi1>, vector<8x128xf32>
    %c127_i32 = arith.constant 127 : i32
    %18 = tpu.dynamic_rotate %17 by %c127_i32 dim 1 : vector<8x128xf32>, i32 -> vector<8x128xf32>
    %19 = vector.broadcast %2 : f32 to vector<8x128xf32>
    %20 = arith.mulf %18, %19 : vector<8x128xf32>
    %21 = arith.addf %10, %20 : vector<8x128xf32>
    %c2_i32 = arith.constant 2 : i32
    %22 = vector.broadcast %c2_i32 : i32 to vector<8x128xi32>
    %23 = arith.cmpi sge, %14, %22 : vector<8x128xi32>
    %24 = arith.select %23, %0, %13 : vector<8x128xi1>, vector<8x128xf32>
    %c126_i32 = arith.constant 126 : i32
    %25 = tpu.dynamic_rotate %24 by %c126_i32 dim 1 : vector<8x128xf32>, i32 -> vector<8x128xf32>
    %26 = vector.broadcast %3 : f32 to vector<8x128xf32>
    %27 = arith.mulf %25, %26 : vector<8x128xf32>
    %28 = arith.addf %21, %27 : vector<8x128xf32>
    %c3_i32 = arith.constant 3 : i32
    %29 = vector.broadcast %c3_i32 : i32 to vector<8x128xi32>
    %30 = arith.cmpi sge, %14, %29 : vector<8x128xi32>
    %31 = arith.select %30, %0, %13 : vector<8x128xi1>, vector<8x128xf32>
    %c125_i32 = arith.constant 125 : i32
    %32 = tpu.dynamic_rotate %31 by %c125_i32 dim 1 : vector<8x128xf32>, i32 -> vector<8x128xf32>
    %33 = vector.broadcast %4 : f32 to vector<8x128xf32>
    %34 = arith.mulf %32, %33 : vector<8x128xf32>
    %35 = arith.addf %28, %34 : vector<8x128xf32>
    %c4_i32 = arith.constant 4 : i32
    %36 = vector.broadcast %c4_i32 : i32 to vector<8x128xi32>
    %37 = arith.cmpi sge, %14, %36 : vector<8x128xi32>
    %38 = arith.select %37, %0, %13 : vector<8x128xi1>, vector<8x128xf32>
    %c124_i32 = arith.constant 124 : i32
    %39 = tpu.dynamic_rotate %38 by %c124_i32 dim 1 : vector<8x128xf32>, i32 -> vector<8x128xf32>
    %40 = vector.broadcast %5 : f32 to vector<8x128xf32>
    %41 = arith.mulf %39, %40 : vector<8x128xf32>
    %42 = arith.addf %35, %41 : vector<8x128xf32>
    %c5_i32 = arith.constant 5 : i32
    %43 = vector.broadcast %c5_i32 : i32 to vector<8x128xi32>
    %44 = arith.cmpi sge, %14, %43 : vector<8x128xi32>
    %45 = arith.select %44, %0, %13 : vector<8x128xi1>, vector<8x128xf32>
    %c123_i32 = arith.constant 123 : i32
    %46 = tpu.dynamic_rotate %45 by %c123_i32 dim 1 : vector<8x128xf32>, i32 -> vector<8x128xf32>
    %47 = vector.broadcast %6 : f32 to vector<8x128xf32>
    %48 = arith.mulf %46, %47 : vector<8x128xf32>
    %49 = arith.addf %42, %48 : vector<8x128xf32>
    %c6_i32 = arith.constant 6 : i32
    %50 = vector.broadcast %c6_i32 : i32 to vector<8x128xi32>
    %51 = arith.cmpi sge, %14, %50 : vector<8x128xi32>
    %52 = arith.select %51, %0, %13 : vector<8x128xi1>, vector<8x128xf32>
    %c122_i32 = arith.constant 122 : i32
    %53 = tpu.dynamic_rotate %52 by %c122_i32 dim 1 : vector<8x128xf32>, i32 -> vector<8x128xf32>
    %54 = vector.broadcast %7 : f32 to vector<8x128xf32>
    %55 = arith.mulf %53, %54 : vector<8x128xf32>
    %56 = arith.addf %49, %55 : vector<8x128xf32>
    %c7_i32 = arith.constant 7 : i32
    %57 = vector.broadcast %c7_i32 : i32 to vector<8x128xi32>
    %58 = arith.cmpi sge, %14, %57 : vector<8x128xi32>
    %59 = arith.select %58, %0, %13 : vector<8x128xi1>, vector<8x128xf32>
    %c121_i32 = arith.constant 121 : i32
    %60 = tpu.dynamic_rotate %59 by %c121_i32 dim 1 : vector<8x128xf32>, i32 -> vector<8x128xf32>
    %61 = vector.broadcast %8 : f32 to vector<8x128xf32>
    %62 = arith.mulf %60, %61 : vector<8x128xf32>
    %63 = arith.addf %56, %62 : vector<8x128xf32>
    %c0_4 = arith.constant 0 : index
    %c0_5 = arith.constant 0 : index
    %64 = vector.load %arg4[%c0_4, %c0_5] : memref<8x128xf32, #tpu.memory_space<vmem>>, vector<8x128xf32>
    tpu.vector_store %arg4[%c0_4, %c0_5], %63 {strides = array<i32>} : memref<8x128xf32, #tpu.memory_space<vmem>>, vector<8x128xf32>,
    return
  }
  func.func @transform_0(%arg0: i32) -> i32 {
    %c0_i32 = arith.constant 0 : i32
    %c0_i32_0 = arith.constant 0 : i32
    return %c0_i32 : i32
  }
  func.func @transform_1(%arg0: i32) -> (i32, i32) {
    %c0_i32 = arith.constant 0 : i32
    %c0_i32_0 = arith.constant 0 : i32
    return %arg0, %c0_i32 : i32, i32
  }
  func.func @transform_2(%arg0: i32) -> (i32, i32) {
    %c1_i32 = arith.constant 1 : i32
    %0 = arith.addi %arg0, %c1_i32 : i32
    %c1_i32_0 = arith.constant 1 : i32
    %1 = arith.muli %0, %c1_i32_0 : i32
    %c0_i32 = arith.constant 0 : i32
    %c0_i32_1 = arith.constant 0 : i32
    return %1, %c0_i32 : i32, i32
  }
  func.func @transform_3(%arg0: i32) -> (i32, i32) {
    %c0_i32 = arith.constant 0 : i32
    %c0_i32_0 = arith.constant 0 : i32
    return %arg0, %c0_i32 : i32, i32
  }
}

</mosaic_0001>

<bundles_post_ra>
// kernel: tpu_custom_call.1
= control target key start
LH: loop header
LB: loop body
LE: loop exit
PB: predicated region body
PF: predicated region fallthrough
CT: control target
= control target key end

     0   :  { %s1046_s0 = inlined_call_operand.hbm [shape: f32[8], index: 0, kind: input, shape index: {}]   ;;  %s1047_s1 = inlined_call_operand.hbm [shape: f32[40,128], index: 1, kind: input, shape index: {}]   ;;  %s1048_s2 = inlined_call_operand.hbm [shape: f32[40,128], index: 2, kind: input, shape index: {}]   ;;  %s1049_s3 = inlined_call_operand.hbm [shape: f32[32,128], index: 3, kind: output, shape index: {}]  }
   0x1   :  { %1056 = sst [smem:[#allocation14_spill]] %s1046_s0 }
   0x2   :  { %8 = vsyncpa [#allocation5], 0 }
   0x3   :  { %9 = vsyncpa [#allocation3], 0 }
   0x4   :  { %11 = vsyncpa [#allocation3 + $0x1], 0 }
   0x5   :  { %12 = vsyncpa [#allocation8], 0 }
   0x6   :  { %14 = vsyncpa [#allocation8 + $0x1], 0 }
   0x7   :  { %15 = vsyncpa [#allocation4], 0 }
   0x8   :  { %17 = vsyncpa [#allocation4 + $0x1], 0  ;;  %s753_s12 = smov 0   ;;  %s755_s13 = smov 0  }
   0x9   :  { %s757_s14 = smov 0   ;;  %s759_s15 = smov 0  }
   0xa   :  { %s761_s16 = smov 0   ;;  %s763_s17 = smov 0  }
   0xb   :  { %s765_s18 = smov 0  }
   0xc LB: > { %s787_s19 = sadd.s32 4294967295, %s720_s18   ;;  %s431_s20 = sadd.s32 4294967294, %s720_s18   ;;  %s720_s18 = sphi %s765_s18, %s1082_s18   ;;  %s716_s17 = sphi %s763_s17, %s1081_s17   ;;  %s712_s16 = sphi %s761_s16, %s1080_s16   ;;  %s708_s15 = sphi %s759_s15, %s1079_s15   ;;  %s704_s14 = sphi %s757_s14, %s1078_s14   ;;  %s700_s13 = sphi %s755_s13, %s1077_s13   ;;  %s696_s12 = sphi %s753_s12, %s1076_s12  }
   0xd   : > { %p64_p0 = scmp.ne.s32.totalorder %s712_s16, %s708_s15  ;;  %p1050_p1 = scmp.eq.s32.totalorder %s787_s19, 0 }
   0xe   : > { %p92_p2 = scmp.ne.s32.totalorder %s700_s13, %s696_s12  ;;  %p122_p5 = scmp.eq.s32.totalorder %s431_s20, 3 }
   0xf   : > { %p797_p4 = por %p1050_p1, %p64_p0  ;;  %p432_p7 = scmp.ge.s32.totalorder %s720_s18, 1 }
  0x10   : > { %p803_p6 = por %p92_p2, %p1050_p1  ;;  %p808_p8 = por %p122_p5, %p64_p0 }
  0x11   : > { %s1057_s21 = scalar_select %p797_p4, 1, 0 }
  0x12   : > { %s1058_s22 = scalar_select %p803_p6, 1, 0 }
  0x13   : > { %s1059_s23 = scalar_select %p808_p8, 1, 0 }
  0x14   : > { %p129_p9 = scmp.lt.s32.totalorder %s720_s18, 5  ;;  %s818_s25 = sadd.s32 1, %s720_s18  }
  0x15   : > { %s48_s26 = ssub.s32 %s720_s18, %s818_s25  ;;  %s51_s27 = sadd.s32 1, %s716_s17 }
  0x16   : > { %p813_p10 = pnand %p432_p7, %p129_p9  ;;  %p831_p13 = scmp.eq.s32.totalorder %s48_s26, 0 }
  0x17   : > { %p58_p0 = scmp.ne.s32.totalorder %s716_s17, %s712_s16  ;;  %p1052_p2 = scmp.eq.s32.totalorder %s720_s18, 0 }
  0x18   : > { %p465_p11 = pneg %p813_p10  ;;  %p1051_p5 = scmp.lt.s32.totalorder %s720_s18, 4 }
  0x19   : > { %s1063_s0 = sld [smem:[#allocation14_spill]] }
  0x1a   : > { %p827_p12 = pnand %p465_p11, %p1050_p1 }
  0x1c   : > { %p550_p9 = pneg %p827_p12 }
  0x1f   : > { %s548_s5 = scalar_lea.hbm %s1063_s0, 16 }
  0x20   : > { %p549_p7 = scmp.ne.s32.totalorder %s1063_s0, %s548_s5  ;;  %p555_p3 = scmp.lt.u32.totalorder %s548_s5, %s1063_s0 }
  0x22   : > { %p551_p11 = pnand %p550_p9, %p549_p7 }
  0x24   : > { %p552_p1 = pneg %p551_p11 }
  0x26   : > { %p557_p8 = pnand %p555_p3, %p552_p1 }
  0x28   : > { %560 = shalt.err (!%p557_p8)
}
  0x29   : > { %s722_s10 = smov [#allocation2]   ;;  %p60_p1 = por %p1052_p2, %p58_p0 }
  0x2a   : > { %468 = dma.hbm_to_smem (!%p827_p12), %s1063_s0, 16, %s722_s10, [#allocation5]  }
  0x2b   : > { %s858_s20 = scalar_select %p831_p13, %s716_s17, %s51_s27  }
  0x2c   : > { %p1064_p3 = scmp.eq.s32.totalorder %s787_s19, 3  ;;  %s151_s28 = sand.u32 1, %s716_s17  }
  0x2d   : > { %s436_s30 = sshll.u32 %s720_s18, 7  ;;  %s435_s4 = sshll.u32 %s151_s28, 3 }
  0x2e   : > { %p870_p8 = por %p1064_p3, %p58_p0  ;;  %s881_s7 = scalar_lea.hbm %s1047_s1, %s436_s30 }
  0x2f   : > { %s155_s27 = scalar_lea.vmem [#allocation6], %s435_s4  ;;  %p885_p12 = pnand %p1051_p5, %p60_p1 }
  0x30   : > { %s1065_s26 = scalar_select %p870_p8, 1, 0 }
  0x31   : > { %s162_s29 = sshll.u32 %s155_s27, 4  ;;  %s152_s9 = scalar_lea.sflag [#allocation3], %s151_s28  ;;  %s889_s29 = int_to_ptr.vmem [resolvable:$true] %s162_s29 }
  0x32   : > { %s561_s10 = scalar_lea.hbm %s881_s7, 128  ;;  %p563_p0 = pneg %p885_p12 }
  0x33   : > { %p562_p13 = scmp.ne.s32.totalorder %s881_s7, %s561_s10  ;;  %s566_s4 = scalar_lea.hbm %s1047_s1, 640 }
  0x34   : > { %p567_p11 = scmp.lt.u32.totalorder %s881_s7, %s1047_s1  ;;  %p568_p1 = scmp.lt.u32.totalorder %s566_s4, %s561_s10 }
  0x35   : > { %p564_p7 = pnand %p563_p0, %p562_p13  ;;  %p570_p5 = scmp.lt.u32.totalorder %s561_s10, %s881_s7 }
  0x36   : > { %p569_p3 = por %p568_p1, %p567_p11 }
  0x37   : > { %p565_p9 = pneg %p564_p7 }
  0x38   : > { %p571_p2 = por %p570_p5, %p569_p3 }
  0x3a   : > { %p572_p8 = pnand %p571_p2, %p565_p9 }
  0x3c   : > { %575 = shalt.err (!%p572_p8)
}
  0x3d   : > { %s576_s28 = scalar_lea.vmem %s889_s29, 128  ;;  %s723_s27 = smov [#allocation6]  }
  0x3e   : > { %p577_p13 = scmp.ne.s32.totalorder %s889_s29, %s576_s28  ;;  %s581_s11 = sshll.u32 %s723_s27, 4  ;;  %s582_s11 = int_to_ptr.vmem [resolvable:$false] %s581_s11 }
  0x3f   : > { %s583_s12 = scalar_lea.vmem %s582_s11, 256  ;;  %p584_p4 = scmp.lt.s32.totalorder %s889_s29, %s582_s11 }
  0x40   : > { %p579_p7 = pnand %p577_p13, %p563_p0  ;;  %p585_p11 = scmp.lt.s32.totalorder %s583_s12, %s576_s28 }
  0x42   : > { %p580_p6 = pneg %p579_p7  ;;  %p586_p1 = por %p585_p11, %p584_p4 }
  0x44   : > { %p587_p5 = pnand %p586_p1, %p580_p6 }
  0x46   : > { %590 = shalt.err (!%p587_p5)
}
  0x47   : > { %472 = dma.hbm_to_vmem [thread:$0]  (!%p885_p12), %s881_s7, 128, %s889_s29, %s152_s9  }
  0x48   : > { %s75_s10 = sadd.s32 1, %s818_s25  ;;  %s79_s4 = sadd.s32 1, %s704_s14 }
  0x49   : > { %s76_s5 = ssub.s32 %s818_s25, %s75_s10  ;;  %p86_p4 = scmp.ne.s32.totalorder %s704_s14, %s700_s13 }
  0x4a   : > { %p77_p6 = scmp.eq.s32.totalorder %s76_s5, 0  ;;  %s169_s6 = sand.u32 1, %s704_s14  }
  0x4b   : > { %p1067_p2 = scmp.eq.s32.totalorder %s720_s18, 0  ;;  %s437_s28 = sshll.u32 %s169_s6, 3 }
  0x4c   : > { %s925_s8 = scalar_select %p77_p6, %s704_s14, %s79_s4  }
  0x4d   : > { %p88_p8 = por %p86_p4, %p1067_p2  ;;  %s364_s12 = scalar_lea.hbm %s1048_s2, %s436_s30 }
  0x4e   : > { %s932_s0 = scalar_lea.hbm %s364_s12, 128  ;;  %s173_s7 = scalar_lea.vmem [#allocation7], %s437_s28 }
  0x4f   : > { %s181_s29 = sshll.u32 %s173_s7, 4  ;;  %p1068_p12 = scmp.lt.s32.totalorder %s720_s18, 4  ;;  %s940_s29 = int_to_ptr.vmem [resolvable:$true] %s181_s29 }
  0x50   : > { %s170_s10 = scalar_lea.sflag [#allocation8], %s169_s6  ;;  %s621_s4 = scalar_lea.hbm %s364_s12, 256 }
  0x51   : > { %p936_p0 = pnand %p1068_p12, %p88_p8  ;;  %p592_p9 = scmp.ne.s32.totalorder %s932_s0, %s621_s4 }
  0x52   : > { %s596_s28 = scalar_lea.hbm %s1048_s2, 640  ;;  %p597_p11 = scmp.lt.u32.totalorder %s932_s0, %s1048_s2 }
  0x53   : > { %p593_p3 = pneg %p936_p0  ;;  %p598_p1 = scmp.lt.u32.totalorder %s596_s28, %s621_s4 }
  0x54   : > { %p600_p4 = scmp.lt.u32.totalorder %s621_s4, %s932_s0 }
  0x55   : > { %p594_p13 = pnand %p593_p3, %p592_p9  ;;  %p599_p5 = por %p598_p1, %p597_p11 }
  0x57   : > { %p595_p7 = pneg %p594_p13  ;;  %p601_p6 = por %p600_p4, %p599_p5 }
  0x59   : > { %p602_p2 = pnand %p601_p6, %p595_p7 }
  0x5b   : > { %605 = shalt.err (!%p602_p2)
}
  0x5c   : > { %s606_s6 = scalar_lea.vmem %s940_s29, 128  ;;  %s724_s12 = smov [#allocation7]  }
  0x5d   : > { %p607_p8 = scmp.ne.s32.totalorder %s940_s29, %s606_s6  ;;  %s611_s7 = sshll.u32 %s724_s12, 4  ;;  %s612_s7 = int_to_ptr.vmem [resolvable:$false] %s611_s7 }
  0x5e   : > { %s613_s30 = scalar_lea.vmem %s612_s7, 256  ;;  %p614_p13 = scmp.lt.s32.totalorder %s940_s29, %s612_s7 }
  0x5f   : > { %p609_p12 = pnand %p607_p8, %p593_p3  ;;  %p615_p11 = scmp.lt.s32.totalorder %s613_s30, %s606_s6 }
  0x61   : > { %p610_p9 = pneg %p609_p12  ;;  %p616_p1 = por %p615_p11, %p614_p13 }
  0x63   : > { %p617_p5 = pnand %p616_p1, %p610_p9 }
  0x65   : > { %620 = shalt.err (!%p617_p5)
}
  0x66   : > { %475 = dma.hbm_to_vmem [thread:$0]  (!%p936_p0), %s932_s0, 128, %s940_s29, %s170_s10  }
  0x67   : > { %190 = sbr.rel (%p813_p10) target bundleno = 274 (0x112), region = 32  ;;  %p1070_p3 = scmp.eq.s32.totalorder (!%p813_p10), %s787_s19, 0 }
  0x6e   : > { %679 = dma.done.wait (%p1070_p3), [#allocation5], 16   ;;  %p1071_p7 = pmov %p1070_p3 }
  0x6f   : > { %s973_s4 = sand.u32 1, %s712_s16   ;;  %p1072_p0 = scmp.ne.s32.totalorder %s1057_s21, 0 }
  0x70   : > { %681 = vsyncadd (%p1071_p7), [#allocation5], 4294967280  ;;  %s441_s9 = sshll.u32 %s973_s4, 3  ;;  %s197_s5 = scalar_lea.sflag [#allocation3], %s973_s4 }
  0x71   : > { %s200_s0 = scalar_lea.vmem [#allocation6], %s441_s9 }
  0x72   : > { %683 = dma.done.wait (%p1072_p0), %s197_s5, 128  }
  0x73   : > { %685 = vsyncadd (%p1072_p0), %s197_s5, 4294967168  ;;  %s205_s24 = sand.u32 1, %s700_s13   ;;  %p1073_p10 = scmp.ne.s32.totalorder %s1058_s22, 0 }
  0x74   : > { %s442_s29 = sshll.u32 %s205_s24, 3  ;;  %s206_s10 = scalar_lea.sflag [#allocation8], %s205_s24 }
  0x75   : > { %s209_s28 = scalar_lea.vmem [#allocation7], %s442_s29 }
  0x76   : > { %687 = dma.done.wait (%p1073_p10), %s206_s10, 128  }
  0x77   : > { %689 = vsyncadd (%p1073_p10), %s206_s10, 4294967168 }
  0x78   : > { %214 = sfence }
  0x79   : > { %v239_v0 = vld [vmem:[%s200_s0] sm:$0xff]  ;;  %v250_v1 = vld [vmem:[%s209_s28] sm:$0x1]  ;;  %vm257_vm0 = vcmask 1046528   ;;  %v259_v2 = vlaneseq  ;;  %s725_s21 = smov 127   ;;  %s726_s27 = smov 125  }
  0x7a   : > { %v252_v3 = vrot.slane %v239_v0, 1  ;;  %v255_v4 = vrot.slane %v250_v1, 1  ;;  %s727_s22 = smov 126   ;;  %s728_s11 = smov 124  }
  0x7b   : > { %v260_v5 = vand.u32 127, %v259_v2  ;;  %s729_s6 = smov 123   ;;  %s730_s12 = smov 122  }
  0x7c   : > { %v258_v6 = vsel %vm257_vm0, %v252_v3, %v255_v4  ;;  %s731_s7 = smov 121   ;;  %s240_s30 = sld [smem:[#allocation2]] }
  0x7d   : > { %vm261_vm1 = vcmp.ge.s32.totalorder %v260_v5, 1  ;;  %vm275_vm2 = vcmp.ge.s32.totalorder %v260_v5, 3  ;;  %vm268_vm3 = vcmp.ge.s32.totalorder %v260_v5, 2  ;;  %vm282_vm4 = vcmp.ge.s32.totalorder %v260_v5, 4  ;;  %s444_s5 = sld [smem:[#allocation2 + $0x1]]  ;;  %s445_s0 = sld [smem:[#allocation2 + $0x2]] }
  0x7e   : > { %v262_v7 = vsel %vm261_vm1, %v239_v0, %v258_v6  ;;  %v276_v8 = vsel %vm275_vm2, %v239_v0, %v258_v6  ;;  %v269_v9 = vsel %vm268_vm3, %v239_v0, %v258_v6  ;;  %v283_v10 = vsel %vm282_vm4, %v239_v0, %v258_v6  ;;  %s446_s24 = sld [smem:[#allocation2 + $0x3]]  ;;  %s447_s29 = sld [smem:[#allocation2 + $0x4]] }
  0x7f   : > { %263 = vrot.lane.b32.xlu0 %v262_v7, %s725_s21  ;;  %277 = vrot.lane.b32.xlu1 %v276_v8, %s726_s27  ;;  %vm289_vm5 = vcmp.ge.s32.totalorder %v260_v5, 5  ;;  %vm296_vm6 = vcmp.ge.s32.totalorder %v260_v5, 6  ;;  %vm303_vm7 = vcmp.ge.s32.totalorder %v260_v5, 7  ;;  %s448_s10 = sld [smem:[#allocation2 + $0x5]]  ;;  %s449_s28 = sld [smem:[#allocation2 + $0x6]] }
  0x80   : > { %v290_v11 = vsel %vm289_vm5, %v239_v0, %v258_v6  ;;  %v297_v12 = vsel %vm296_vm6, %v239_v0, %v258_v6  ;;  %v304_v13 = vsel %vm303_vm7, %v239_v0, %v258_v6  ;;  %s450_s21 = sld [smem:[#allocation2 + $0x7]]  ;;  %s452_s27 = sshll.u32 %s787_s19, 7 }
  0x81   : > { %p1074_p6 = scmp.ne.s32.totalorder %s1065_s26, 0  ;;  %s732_s19 = smov [#allocation9]  }
  0x82   : > { %v248_v14 = vstv %s240_s30  ;;  %s312_s30 = scalar_lea.sflag [#allocation4], %s973_s4 }
  0x83   : > { %270 = vrot.lane.b32.xlu0 %v269_v9, %s727_s22  ;;  %284 = vrot.lane.b32.xlu1 %v283_v10, %s728_s11  ;;  %v265_v15 = vstv %s444_s5  ;;  %v249_v18 = vmul.f32 %v248_v14, %v239_v0  ;;  %v272_v20 = vstv %s445_s0  ;;  %s237_s22 = scalar_lea.vmem [#allocation9], %s441_s9  ;;  %s626_s9 = sshll.u32 %s732_s19, 4  ;;  %s627_s9 = int_to_ptr.vmem [resolvable:$false] %s626_s9 }
  0x84   : > { %v279_v21 = vstv %s446_s24  ;;  %v286_v23 = vstv %s447_s29  ;;  %s325_s11 = sshll.u32 %s237_s22, 4  ;;  %s628_s0 = scalar_lea.vmem %s627_s9, 256  ;;  %s996_s11 = int_to_ptr.vmem [resolvable:$true] %s325_s11 }
  0x85   : > { %v293_v27 = vstv %s448_s10  ;;  %v300_v32 = vstv %s449_s28  ;;  %s622_s5 = scalar_lea.vmem %s996_s11, 128  ;;  %p629_p12 = scmp.lt.s32.totalorder %s996_s11, %s627_s9 }
  0x86   : > { %v307_v36 = vstv %s450_s21  ;;  %p623_p4 = scmp.ne.s32.totalorder %s996_s11, %s622_s5  ;;  %p630_p9 = scmp.lt.s32.totalorder %s628_s0, %s622_s5 }
  0x87   : > { %291 = vrot.lane.b32.xlu0 %v290_v11, %s729_s6  ;;  %298 = vrot.lane.b32.xlu1 %v297_v12, %s730_s12 }
  0x88   : > { %p624_p2 = pnand %p623_p4, %p1074_p6  ;;  %p631_p13 = por %p630_p9, %p629_p12 }
  0x8a   : > { %p625_p8 = pneg %p624_p2 }
  0x8b   : > { %305 = vrot.lane.b32.xlu0 %v304_v13, %s731_s7  ;;  %s994_s7 = scalar_lea.hbm %s1049_s3, %s452_s27 }
  0x8c   : > { %p632_p11 = pnand %p631_p13, %p625_p8 }
  0xf1   : > { %v264_v16 = vpop.permute.xlu0 %263  ;;  %v278_v17 = vpop.permute.xlu1 %277 }
  0xf2   : > { %v266_v19 = vmul.f32 %v265_v15, %v264_v16  ;;  %v280_v28 = vmul.f32 %v279_v21, %v278_v17 }
  0xf4   : > { %v267_v25 = vadd.f32 %v266_v19, %v249_v18 }
  0xf5   : > { %v271_v22 = vpop.permute.xlu0 %270  ;;  %v285_v24 = vpop.permute.xlu1 %284 }
  0xf6   : > { %v273_v26 = vmul.f32 %v272_v20, %v271_v22  ;;  %v287_v30 = vmul.f32 %v286_v23, %v285_v24 }
  0xf8   : > { %v274_v29 = vadd.f32 %v273_v26, %v267_v25 }
  0xf9   : > { %v292_v31 = vpop.permute.xlu0 %291  ;;  %v299_v33 = vpop.permute.xlu1 %298 }
  0xfa   : > { %v281_v34 = vadd.f32 %v280_v28, %v274_v29  ;;  %v294_v35 = vmul.f32 %v293_v27, %v292_v31  ;;  %v301_v38 = vmul.f32 %v300_v32, %v299_v33 }
  0xfc   : > { %v288_v37 = vadd.f32 %v287_v30, %v281_v34 }
  0xfd   : > { %v306_v39 = vpop.permute.xlu0 %305 }
  0xfe   : > { %v295_v40 = vadd.f32 %v294_v35, %v288_v37  ;;  %v308_v41 = vmul.f32 %v307_v36, %v306_v39 }
 0x100   : > { %v302_v42 = vadd.f32 %v301_v38, %v295_v40 }
 0x102   : > { %v309_v43 = vadd.f32 %v308_v41, %v302_v42 }
 0x104   : > { %310 = vst [vmem:[%s237_s22] sm:$0xff] %v309_v43 }
 0x105   : > { %635 = shalt.err (!%p632_p11)
}
 0x106   : > { %s636_s4 = scalar_lea.hbm %s994_s7, 128  ;;  %s640_s10 = scalar_lea.hbm %s1049_s3, 512 }
 0x107   : > { %p637_p1 = scmp.ne.s32.totalorder %s994_s7, %s636_s4  ;;  %p641_p7 = scmp.lt.u32.totalorder %s994_s7, %s1049_s3 }
 0x108   : > { %p642_p0 = scmp.lt.u32.totalorder %s640_s10, %s636_s4  ;;  %p644_p4 = scmp.lt.u32.totalorder %s636_s4, %s994_s7 }
 0x109   : > { %p638_p5 = pnand %p637_p1, %p1074_p6 }
 0x10a   : > { %p643_p10 = por %p642_p0, %p641_p7 }
 0x10b   : > { %p639_p3 = pneg %p638_p5 }
 0x10c   : > { %p645_p2 = por %p644_p4, %p643_p10 }
 0x10e   : > { %p646_p8 = pnand %p645_p2, %p639_p3 }
 0x110   : > { %649 = shalt.err (!%p646_p8)
}
 0x111   : > { %463 = dma.vmem_to_hbm [thread:$0]  (%p1074_p6), %s996_s11, 128, %s994_s7, %s312_s30  }
 0x112 PF: > { %p483_p12 = scmp.ge.s32.totalorder %s720_s18, 2  ;;  %s337_s27 = sand.u32 1, %s708_s15  }
 0x113   : > { %p1075_p9 = scmp.ne.s32.totalorder %s1059_s23, 0  ;;  %s338_s22 = scalar_lea.sflag [#allocation4], %s337_s27 }
 0x115   : > { %p477_p13 = pnand %p483_p12, %p1075_p9 }
 0x117   : > { %691 = dma.done.wait (!%p477_p13), %s338_s22, 128  }
 0x118   : > { %693 = vsyncadd (!%p477_p13), %s338_s22, 4294967168  ;;  %p20_p6 = scmp.ge.s32.totalorder %s818_s25, 6   ;;  %s1076_s12 = smov %s700_s13 }
 0x119   : > { %s1077_s13 = smov %s704_s14  ;;  %s1078_s14 = smov %s925_s8 }
 0x11a   : > { %s1079_s15 = smov %s712_s16  ;;  %s1080_s16 = smov %s716_s17 }
 0x11b   : > { %s1081_s17 = smov %s858_s20  ;;  %s1082_s18 = smov %s818_s25 }
 0x11c   :  { %22 = sbr.rel (!%p20_p6) target bundleno = 12 (0xc), region = 95 }
 0x123   :  { %343 = vsyncpa [#allocation3], 1 }
 0x124   :  { %345 = vsyncpa [#allocation3 + $0x1], 1 }
 0x125   :  { %346 = vsyncpa [#allocation8], 1 }
 0x126   :  { %348 = vsyncpa [#allocation8 + $0x1], 1 }
 0x127   :  { %349 = vsyncpa [#allocation4], 1 }
 0x128   :  { %351 = vsyncpa [#allocation4 + $0x1], 1 }
 0x129   :  { %352 = vsyncpa [#allocation5], 1 }
 0x12a   :  { %354 = vsyncpa [#allocation5 + $0x1], 1 }

</bundles_post_ra>
